<compile_context>
chip_gen: v7x
topology: tpu7x:2x2x1
jax: 0.10.0
libtpu: 0.0.40
codegen_flags: <defaults>
</compile_context>

<pallas_src>
import jax
import jax.numpy as jnp
from jax.experimental import pallas as pl
from jax.experimental.pallas import tpu as pltpu


def _round_up(n: int, m: int) -> int:
    return ((n + m - 1) // m) * m


def _cdiv(a: int, b: int) -> int:
    return (a + b - 1) // b


def _vmem_capacity_bytes() -> int:
    """Per-core VMEM capacity; conservative fallback = v7x's 64 MiB."""
    try:
        return int(pltpu.get_tpu_info().vmem_capacity_bytes)
    except Exception:
        return 64 << 20


def autoencoder_kernel(x_ref, we_ref, be_ref, wd_ref, bd_ref, dec_ref, enc_ref):
    """Fused forward pass for one batch tile:
         encoded = relu(x @ We + be)
         decoded = sigmoid(encoded @ Wd + bd)
    """
    x = x_ref[...]                                    # (TB, Dp)  (f32 or bf16)
    we = we_ref[...]                                  # (Dp, Hp)
    wd = wd_ref[...]                                  # (Hp, Dp)

    # ---- encoder: Linear + ReLU (MXU matmul, f32 accumulate; ReLU on VPU) ----
    pre_e = jnp.dot(x, we, preferred_element_type=jnp.float32) + be_ref[...]
    enc = jnp.maximum(pre_e, 0.0)
    enc_ref[...] = enc.astype(enc_ref.dtype)

    # ---- decoder: Linear + Sigmoid (exp/recip go to EUP) ----
    pre_d = jnp.dot(enc.astype(wd.dtype), wd,
                    preferred_element_type=jnp.float32) + bd_ref[...]
    dec_ref[...] = jax.nn.sigmoid(pre_d).astype(dec_ref.dtype)


def prepare_params(w_enc, b_enc, w_dec, b_dec, *, matmul_dtype=None):
    """Cast + lane-pad the parameters ONCE (reused across forward calls)."""
    d_in, h = w_enc.shape
    mm_dtype = jnp.dtype(matmul_dtype) if matmul_dtype is not None else w_enc.dtype
    # Lane-dense padding to 128.  (Bumping to 256 on v6e/v7x only pays off when
    # MXU-bound; this kernel is HBM-bound at realistic sizes, so keep 128.)
    Dp = _round_up(d_in, 128)
    Hp = _round_up(h, 128)

    def cast(a):
        return a if a.dtype == mm_dtype else a.astype(mm_dtype)

    wep, wdp = cast(w_enc), cast(w_dec)
    if Dp != d_in or Hp != h:
        wep = jnp.pad(wep, ((0, Dp - d_in), (0, Hp - h)))
        wdp = jnp.pad(wdp, ((0, Hp - h), (0, Dp - d_in)))
    bep = b_enc.astype(jnp.float32)
    bdp = b_dec.astype(jnp.float32)
    if Hp != h:
        bep = jnp.pad(bep, (0, Hp - h))
    if Dp != d_in:
        bdp = jnp.pad(bdp, (0, Dp - d_in))
    return (wep, bep.reshape(1, Hp), wdp, bdp.reshape(1, Dp)), (d_in, h)


def _forward_padded(x, wep, bep, wdp, bdp, *, d_in, h, block_b, io_buffers):
    B = x.shape[0]
    out_dtype = x.dtype
    mm_dtype = wep.dtype
    itm = jnp.dtype(mm_dtype).itemsize
    out_itm = jnp.dtype(out_dtype).itemsize
    Dp, Hp = wep.shape

    # Sublane-packing multiple for the matmul dtype: 8 (f32) / 16 (bf16) / 32 (int8/fp8).
    sub = 8 * max(1, 4 // itm)

    # ---- generation-aware VMEM budget & resident-parameter footprint ----
    capacity = _vmem_capacity_bytes()
    budget = int(capacity * 0.8)            # ~51 MiB on v7x, ~102 MiB on v5e/v6e
    param_bytes = (Dp * Hp + Hp * Dp) * itm + (Hp + Dp) * 4   # single-buffered
    if param_bytes > budget // 2:
        # TODO(synk): feature-tile the hidden/input dims (reduction grid axis +
        # f32 accumulator scratch, or split encoder/decoder into two calls)
        # when the weight matrices no longer fit in VMEM (hits v7x first).
        raise NotImplementedError(
            "Autoencoder weights exceed the resident-in-VMEM budget for this TPU.")

    # ---- batch tile: largest that fits the budget, balanced over >=2 grid steps ----
    row_bytes = io_buffers * (Dp * itm + Dp * out_itm + Hp * out_itm)
    tb_cap = max(sub, ((budget - param_bytes) // row_bytes) // sub * sub)
    TB = max(sub, min(_round_up(block_b, sub), tb_cap))
    nt = _cdiv(B, TB)
    if nt < 2 and B >= 2 * sub:
        nt = 2                               # >=2 steps: pipelining + v7x megacore
    TB = _round_up(_cdiv(B, nt), sub)        # balanced tiles -> tiny padding waste
    Bp = nt * TB

    # ---- pad/cast x only when needed (zero-pad keeps the math exact) ----
    xq = x if x.dtype == mm_dtype else x.astype(mm_dtype)
    if Bp != B or Dp != d_in:
        xq = jnp.pad(xq, ((0, Bp - B), (0, Dp - d_in)))

    # VMEM limit from the actual footprint (+ compiler headroom), clamped to capacity.
    footprint = param_bytes + TB * row_bytes
    vmem_limit = int(min(max(footprint + (4 << 20), 16 << 20), capacity))

    cost = pl.CostEstimate(
        flops=2 * B * d_in * h + 2 * B * h * d_in,
        transcendentals=B * d_in,                       # sigmoid
        bytes_accessed=int(xq.size * itm + wep.size * itm + wdp.size * itm
                           + bep.size * 4 + bdp.size * 4
                           + Bp * Dp * out_itm + Bp * Hp * out_itm),
    )

    # Constant-index parameters: single buffer (halves resident weight VMEM).
    param_mode = pl.Buffered(1)
    # Streaming x / outputs: default double buffering; raise to 3 on v5e if the
    # DMA is exposed (io_buffers=3).
    io_mode = pl.Buffered(io_buffers) if io_buffers != 2 else None

    dec_pad, enc_pad = pl.pallas_call(
        autoencoder_kernel,
        out_shape=(
            jax.ShapeDtypeStruct((Bp, Dp), out_dtype),   # decoded (padded)
            jax.ShapeDtypeStruct((Bp, Hp), out_dtype),   # encoded (padded)
        ),
        grid=(nt,),
        in_specs=[
            pl.BlockSpec((TB, Dp), lambda i: (i, 0), pipeline_mode=io_mode),
            pl.BlockSpec((Dp, Hp), lambda i: (0, 0), pipeline_mode=param_mode),
            pl.BlockSpec((1, Hp), lambda i: (0, 0), pipeline_mode=param_mode),
            pl.BlockSpec((Hp, Dp), lambda i: (0, 0), pipeline_mode=param_mode),
            pl.BlockSpec((1, Dp), lambda i: (0, 0), pipeline_mode=param_mode),
        ],
        out_specs=(
            pl.BlockSpec((TB, Dp), lambda i: (i, 0), pipeline_mode=io_mode),
            pl.BlockSpec((TB, Hp), lambda i: (i, 0), pipeline_mode=io_mode),
        ),
        compiler_params=pltpu.CompilerParams(
            dimension_semantics=("parallel",),           # megacore sharding on v7x
            vmem_limit_bytes=vmem_limit,
        ),
        cost_estimate=cost,
    )(xq, wep, bep, wdp, bdp)

    # Strip padding back to the module's true shapes (no-op slices elided).
    decoded = dec_pad if (Bp == B and Dp == d_in) else dec_pad[:B, :d_in]
    encoded = enc_pad if (Bp == B and Hp == h) else enc_pad[:B, :h]
    return decoded, encoded


def make_autoencoder_forward(w_enc, b_enc, w_dec, b_dec, *, matmul_dtype=None,
                             block_b: int = 1024, io_buffers: int = 2):
    """Builds a jitted forward(x) -> (decoded, encoded), matching the PyTorch
    Autoencoder.  Weight cast + padding is hoisted here (done once, not per call).
    matmul_dtype=jnp.bfloat16 is the recommended production setting on v6e/v7x
    (full-rate MXU, half the x/weight DMA bytes; accumulation stays f32)."""
    params, (d_in, h) = prepare_params(w_enc, b_enc, w_dec, b_dec,
                                       matmul_dtype=matmul_dtype)
    params = jax.device_put(params)

    @jax.jit
    def _fwd(x, wep, bep, wdp, bdp):
        return _forward_padded(x, wep, bep, wdp, bdp, d_in=d_in, h=h,
                               block_b=block_b, io_buffers=io_buffers)

    def forward(x):
        return _fwd(x, *params)

    return forward


if __name__ == "__main__":
    # Small, deterministic shapes: batch=8, input features=64, latent=32.
    B, D_IN, H = 8, 64, 32

    key = jax.random.PRNGKey(0)
    k_x, k_we, k_be, k_wd, k_bd = jax.random.split(key, 5)

    x = jax.random.normal(k_x, (B, D_IN), dtype=jnp.float32)
    w_enc = jax.random.normal(k_we, (D_IN, H), dtype=jnp.float32) * (1.0 / jnp.sqrt(D_IN))
    b_enc = jax.random.normal(k_be, (H,), dtype=jnp.float32) * 0.01
    w_dec = jax.random.normal(k_wd, (H, D_IN), dtype=jnp.float32) * (1.0 / jnp.sqrt(H))
    b_dec = jax.random.normal(k_bd, (D_IN,), dtype=jnp.float32) * 0.01

    # Pure-JAX reference.
    enc_ref = jnp.maximum(x @ w_enc + b_enc, 0.0)
    dec_ref = jax.nn.sigmoid(enc_ref @ w_dec + b_dec)

    # f32 matmul path (strict check against the reference).
    fwd = make_autoencoder_forward(w_enc, b_enc, w_dec, b_dec)
    decoded, encoded = fwd(x)
    jax.block_until_ready((decoded, encoded))
    assert decoded.shape == (B, D_IN) and encoded.shape == (B, H)
    assert jnp.allclose(encoded, enc_ref, atol=1e-5, rtol=1e-5)
    assert jnp.allclose(decoded, dec_ref, atol=1e-5, rtol=1e-5)

    # bf16-matmul path (production option for v6e/v7x): loose tolerance check.
    fwd_bf16 = make_autoencoder_forward(w_enc, b_enc, w_dec, b_dec,
                                        matmul_dtype=jnp.bfloat16)
    decoded_b, encoded_b = fwd_bf16(x)
    jax.block_until_ready((decoded_b, encoded_b))
    assert jnp.allclose(encoded_b, enc_ref, atol=3e-2, rtol=3e-2)
    assert jnp.allclose(decoded_b, dec_ref, atol=3e-2, rtol=3e-2)

    print("KERNEL_OK")
</pallas_src>

<mosaic_0001>
module attributes {stable_mosaic.version = 11 : i64} {
  func.func @autoencoder_kernel(%arg0: i32, %arg1: memref<8x128xf32, #tpu.memory_space<vmem>>, %arg2: memref<128x128xf32, #tpu.memory_space<vmem>>, %arg3: memref<1x128xf32, #tpu.memory_space<vmem>>, %arg4: memref<128x128xf32, #tpu.memory_space<vmem>>, %arg5: memref<1x128xf32, #tpu.memory_space<vmem>>, %arg6: memref<8x128xf32, #tpu.memory_space<vmem>>, %arg7: memref<8x128xf32, #tpu.memory_space<vmem>>) attributes {dimension_semantics = [#tpu.dimension_semantics<parallel>], iteration_bounds = array<i64: 1>, scalar_prefetch = 0 : i64, scratch_operands = 0 : i64, tpu.core_type = #tpu.core_type<tc>, window_params = [{transform_indices = @transform_0, window_bounds = array<i64: 8, 128>}, {pipeline_mode = #tpu.pipeline_mode<synchronous>, transform_indices = @transform_1, window_bounds = array<i64: 128, 128>}, {pipeline_mode = #tpu.pipeline_mode<synchronous>, transform_indices = @transform_2, window_bounds = array<i64: 1, 128>}, {pipeline_mode = #tpu.pipeline_mode<synchronous>, transform_indices = @transform_3, window_bounds = array<i64: 128, 128>}, {pipeline_mode = #tpu.pipeline_mode<synchronous>, transform_indices = @transform_4, window_bounds = array<i64: 1, 128>}, {transform_indices = @transform_5, window_bounds = array<i64: 8, 128>}, {transform_indices = @transform_6, window_bounds = array<i64: 8, 128>}]} {
    %c0 = arith.constant 0 : index
    %c0_0 = arith.constant 0 : index
    %0 = vector.load %arg1[%c0, %c0_0] : memref<8x128xf32, #tpu.memory_space<vmem>>, vector<8x128xf32>
    %c0_1 = arith.constant 0 : index
    %c0_2 = arith.constant 0 : index
    %1 = vector.load %arg2[%c0_1, %c0_2] : memref<128x128xf32, #tpu.memory_space<vmem>>, vector<128x128xf32>
    %c0_3 = arith.constant 0 : index
    %c0_4 = arith.constant 0 : index
    %2 = vector.load %arg4[%c0_3, %c0_4] : memref<128x128xf32, #tpu.memory_space<vmem>>, vector<128x128xf32>
    %cst = arith.constant dense<0.000000e+00> : vector<8x128xf32>
    %3 = tpu.matmul %0, %1, %cst {dimension_numbers = #tpu.dot_dimension_numbers<[1], [0], [0], [1], [0, 0, 1, 1], [], []>} : vector<8x128xf32>, vector<128x128xf32>, vector<8x128xf32> -> vector<8x128xf32>
    %c0_5 = arith.constant 0 : index
    %c0_6 = arith.constant 0 : index
    %4 = vector.load %arg3[%c0_5, %c0_6] : memref<1x128xf32, #tpu.memory_space<vmem>>, vector<1x128xf32>
    %5 = vector.broadcast %4 : vector<1x128xf32> to vector<8x128xf32>
    %6 = arith.addf %3, %5 : vector<8x128xf32>
    %cst_7 = arith.constant 0.000000e+00 : f32
    %7 = vector.broadcast %cst_7 : f32 to vector<8x128xf32>
    %8 = arith.maximumf %6, %7 : vector<8x128xf32>
    %c0_8 = arith.constant 0 : index
    %c0_9 = arith.constant 0 : index
    %9 = vector.load %arg7[%c0_8, %c0_9] : memref<8x128xf32, #tpu.memory_space<vmem>>, vector<8x128xf32>
    tpu.vector_store %arg7[%c0_8, %c0_9], %8 {strides = array<i32>} : memref<8x128xf32, #tpu.memory_space<vmem>>, vector<8x128xf32>,
    %cst_10 = arith.constant dense<0.000000e+00> : vector<8x128xf32>
    %10 = tpu.matmul %8, %2, %cst_10 {dimension_numbers = #tpu.dot_dimension_numbers<[1], [0], [0], [1], [0, 0, 1, 1], [], []>} : vector<8x128xf32>, vector<128x128xf32>, vector<8x128xf32> -> vector<8x128xf32>
    %c0_11 = arith.constant 0 : index
    %c0_12 = arith.constant 0 : index
    %11 = vector.load %arg5[%c0_11, %c0_12] : memref<1x128xf32, #tpu.memory_space<vmem>>, vector<1x128xf32>
    %12 = vector.broadcast %11 : vector<1x128xf32> to vector<8x128xf32>
    %13 = arith.addf %10, %12 : vector<8x128xf32>
    %14 = arith.negf %13 : vector<8x128xf32>
    %15 = math.exp %14 : vector<8x128xf32>
    %cst_13 = arith.constant 1.000000e+00 : f32
    %16 = vector.broadcast %cst_13 : f32 to vector<8x128xf32>
    %17 = arith.addf %16, %15 : vector<8x128xf32>
    %18 = arith.divf %16, %17 : vector<8x128xf32>
    %c0_14 = arith.constant 0 : index
    %c0_15 = arith.constant 0 : index
    %19 = vector.load %arg6[%c0_14, %c0_15] : memref<8x128xf32, #tpu.memory_space<vmem>>, vector<8x128xf32>
    tpu.vector_store %arg6[%c0_14, %c0_15], %18 {strides = array<i32>} : memref<8x128xf32, #tpu.memory_space<vmem>>, vector<8x128xf32>,
    return
  }
  func.func @transform_0(%arg0: i32) -> (i32, i32) {
    %c0_i32 = arith.constant 0 : i32
    %c0_i32_0 = arith.constant 0 : i32
    return %arg0, %c0_i32 : i32, i32
  }
  func.func @transform_1(%arg0: i32) -> (i32, i32) {
    %c0_i32 = arith.constant 0 : i32
    %c0_i32_0 = arith.constant 0 : i32
    %c0_i32_1 = arith.constant 0 : i32
    return %c0_i32, %c0_i32_0 : i32, i32
  }
  func.func @transform_2(%arg0: i32) -> (i32, i32) {
    %c0_i32 = arith.constant 0 : i32
    %c0_i32_0 = arith.constant 0 : i32
    %c0_i32_1 = arith.constant 0 : i32
    return %c0_i32, %c0_i32_0 : i32, i32
  }
  func.func @transform_3(%arg0: i32) -> (i32, i32) {
    %c0_i32 = arith.constant 0 : i32
    %c0_i32_0 = arith.constant 0 : i32
    %c0_i32_1 = arith.constant 0 : i32
    return %c0_i32, %c0_i32_0 : i32, i32
  }
  func.func @transform_4(%arg0: i32) -> (i32, i32) {
    %c0_i32 = arith.constant 0 : i32
    %c0_i32_0 = arith.constant 0 : i32
    %c0_i32_1 = arith.constant 0 : i32
    return %c0_i32, %c0_i32_0 : i32, i32
  }
  func.func @transform_5(%arg0: i32) -> (i32, i32) {
    %c0_i32 = arith.constant 0 : i32
    %c0_i32_0 = arith.constant 0 : i32
    return %arg0, %c0_i32 : i32, i32
  }
  func.func @transform_6(%arg0: i32) -> (i32, i32) {
    %c0_i32 = arith.constant 0 : i32
    %c0_i32_0 = arith.constant 0 : i32
    return %arg0, %c0_i32 : i32, i32
  }
}

</mosaic_0001>

<bundles_post_ra>
// kernel: _fwd.1
= control target key start
LH: loop header
LB: loop body
LE: loop exit
PB: predicated region body
PF: predicated region fallthrough
CT: control target
= control target key end

     0   :  { %12 = vsyncpa [#allocation3], 0  ;;  %s659_s0 = inlined_call_operand.vmem [shape: f32[8,128], index: 0, kind: input, shape index: {}]   ;;  %s660_s1 = inlined_call_operand.hbm [shape: f32[128,128], index: 1, kind: input, shape index: {}]   ;;  %s661_s2 = inlined_call_operand.vmem [shape: f32[1,128], index: 2, kind: input, shape index: {}]   ;;  %s662_s3 = inlined_call_operand.hbm [shape: f32[128,128], index: 3, kind: input, shape index: {}]   ;;  %s663_s4 = inlined_call_operand.vmem [shape: f32[1,128], index: 4, kind: input, shape index: {}]   ;;  %s664_s5 = inlined_call_operand.hbm [shape: f32[8,128], index: 5, kind: output, shape index: {0}]   ;;  %s665_s6 = inlined_call_operand.hbm [shape: f32[8,128], index: 6, kind: output, shape index: {1}]  }
   0x1   :  { %13 = vsyncpa [#allocation6], 0 }
   0x2   :  { %14 = vsyncpa [#allocation4], 0 }
   0x3   :  { %15 = vsyncpa [#allocation9], 0  ;;  %s542_s21 = smov [#allocation2]   ;;  %s446_s25 = scalar_lea.hbm %s660_s1, 2048 }
   0x4   :  { %s23_s22 = sshll.u32 %s542_s21, 4  ;;  %p447_p0 = scmp.ne.s32.totalorder %s660_s1, %s446_s25  ;;  %s24_s22 = int_to_ptr.vmem [resolvable:$true] %s23_s22 }
   0x5   :  { %p450_p1 = scmp.lt.u32.totalorder %s446_s25, %s660_s1 }
   0x7   :  { %p452_p2 = pnand %p450_p1, %p447_p0 }
   0x9   :  { %455 = shalt.err (!%p452_p2)
}
   0xa   :  { %s456_s30 = scalar_lea.vmem %s24_s22, 2048  ;;  %p461_p4 = scmp.lt.s32.totalorder %s24_s22, %s24_s22 }
   0xb   :  { %p457_p3 = scmp.ne.s32.totalorder %s24_s22, %s456_s30  ;;  %p462_p5 = scmp.lt.s32.totalorder %s456_s30, %s456_s30 }
   0xd   :  { %p463_p6 = por %p462_p5, %p461_p4 }
   0xf   :  { %p464_p7 = pnand %p463_p6, %p457_p3 }
  0x11   :  { %467 = shalt.err (!%p464_p7)
}
  0x12   :  { %s543_s7 = smov 128   ;;  %s544_s8 = smov 8  }
  0x13   :  { %29 = dma.hbm_to_vmem [thread:$0]  %s660_s1, 2048, %s24_s22, [#allocation3], %s543_s7, %s543_s7, %s544_s8  }
  0x14   :  { %s545_s11 = smov [#allocation5]   ;;  %s468_s15 = scalar_lea.hbm %s662_s3, 2048 }
  0x15   :  { %s37_s12 = sshll.u32 %s545_s11, 4  ;;  %p469_p8 = scmp.ne.s32.totalorder %s662_s3, %s468_s15  ;;  %s38_s12 = int_to_ptr.vmem [resolvable:$true] %s37_s12 }
  0x16   :  { %p472_p9 = scmp.lt.u32.totalorder %s468_s15, %s662_s3 }
  0x18   :  { %p474_p10 = pnand %p472_p9, %p469_p8 }
  0x1a   :  { %477 = shalt.err (!%p474_p10)
}
  0x1b   :  { %s478_s20 = scalar_lea.vmem %s38_s12, 2048  ;;  %p483_p12 = scmp.lt.s32.totalorder %s38_s12, %s38_s12 }
  0x1c   :  { %p479_p11 = scmp.ne.s32.totalorder %s38_s12, %s478_s20  ;;  %p484_p13 = scmp.lt.s32.totalorder %s478_s20, %s478_s20 }
  0x1e   :  { %p485_p0 = por %p484_p13, %p483_p12 }
  0x20   :  { %p486_p1 = pnand %p485_p0, %p479_p11 }
  0x22   :  { %489 = shalt.err (!%p486_p1)
}
  0x23   :  { %43 = dma.hbm_to_vmem [thread:$0]  %s662_s3, 2048, %s38_s12, [#allocation6], %s543_s7, %s543_s7, %s544_s8  }
  0x24   :  { %534 = dma.done.wait [#allocation3], 2048  }
  0x25   :  { %535 = vsyncadd [#allocation3], 4294965248 }
  0x26   :  { %536 = dma.done.wait [#allocation6], 2048  }
  0x27   :  { %537 = vsyncadd [#allocation6], 4294965248  ;;  %v546_v0 = vmov 0.0|0.0   ;;  %vm547_vm0 = vmmov 0   ;;  %v548_v1 = vmov 0.0   ;;  %v53_v2 = vld [vmem:[#allocation2] sm:$0xff] }
  0x28   :  { %385 = vmatprep.subr.bf16.mxu0 %v546_v0  ;;  %347 = vmatprep.mubr.msk.f32.mxu0 %vm547_vm0, %v548_v1  ;;  %v54_v3 = vld [vmem:[#allocation2 + $0x8] sm:$0xff]  ;;  %v55_v4 = vld [vmem:[#allocation2 + $0x10] sm:$0xff]  ;;  %v56_v6 = vld [vmem:[#allocation2 + $0x18] sm:$0xff]  ;;  %s549_s25 = smov [#allocation8]  }
  0x29   :  { %409 = vmatprep.subr.bf16.mxu1 %v546_v0  ;;  %382 = vmatprep.mubr.msk.f32.mxu1 %vm547_vm0, %v548_v1  ;;  %v386_v5 = vpack.c.bf16 %v54_v3, %v53_v2  ;;  %v389_v7 = vpack.c.bf16 %v56_v6, %v55_v4  ;;  %v57_v8 = vld [vmem:[#allocation2 + $0x20] sm:$0xff]  ;;  %v58_v9 = vld [vmem:[#allocation2 + $0x28] sm:$0xff]  ;;  %v71_v12 = vld [vmem:[#allocation5 + $0x10] sm:$0xff] }
  0x2a   :  { %v69_v10 = vld [vmem:[#allocation5] sm:$0xff]  ;;  %v70_v11 = vld [vmem:[#allocation5 + $0x8] sm:$0xff]  ;;  %v72_v13 = vld [vmem:[#allocation5 + $0x18] sm:$0xff]  ;;  %v392_v14 = vpack.c.bf16 %v58_v9, %v57_v8 }
  0x2b   :  { %387 = vmatpush3.bf16.msra.mxu0 %v386_v5  ;;  %v410_v15 = vpack.c.bf16 %v70_v11, %v69_v10  ;;  %v59_v16 = vld [vmem:[#allocation2 + $0x30] sm:$0xff]  ;;  %v60_v17 = vld [vmem:[#allocation2 + $0x38] sm:$0xff]  ;;  %v413_v18 = vpack.c.bf16 %v72_v13, %v71_v12  ;;  %v73_v19 = vld [vmem:[#allocation5 + $0x20] sm:$0xff] }
  0x2c   :  { %388 = vmatprep.subr.bf16.mxu0 %v546_v0  ;;  %v74_v20 = vld [vmem:[#allocation5 + $0x28] sm:$0xff]  ;;  %v395_v21 = vpack.c.bf16 %v60_v17, %v59_v16  ;;  %v61_v22 = vld [vmem:[#allocation2 + $0x40] sm:$0xff]  ;;  %v75_v25 = vld [vmem:[#allocation5 + $0x30] sm:$0xff] }
  0x2d   :  { %411 = vmatpush3.bf16.msra.mxu1 %v410_v15  ;;  %v62_v23 = vld [vmem:[#allocation2 + $0x48] sm:$0xff]  ;;  %v416_v24 = vpack.c.bf16 %v74_v20, %v73_v19  ;;  %v76_v26 = vld [vmem:[#allocation5 + $0x38] sm:$0xff]  ;;  %v63_v28 = vld [vmem:[#allocation2 + $0x50] sm:$0xff] }
  0x2e   :  { %412 = vmatprep.subr.bf16.mxu1 %v546_v0  ;;  %v398_v27 = vpack.c.bf16 %v62_v23, %v61_v22  ;;  %v64_v29 = vld [vmem:[#allocation2 + $0x58] sm:$0xff]  ;;  %v419_v30 = vpack.c.bf16 %v76_v26, %v75_v25  ;;  %v77_v31 = vld [vmem:[#allocation5 + $0x40] sm:$0xff]  ;;  %v78_v32 = vld [vmem:[#allocation5 + $0x48] sm:$0xff] }
  0x2f   :  { %390 = vmatpush3.bf16.msra.mxu0 %v389_v7  ;;  %v401_v33 = vpack.c.bf16 %v64_v29, %v63_v28  ;;  %v65_v34 = vld [vmem:[#allocation2 + $0x60] sm:$0xff]  ;;  %v66_v35 = vld [vmem:[#allocation2 + $0x68] sm:$0xff]  ;;  %v422_v36 = vpack.c.bf16 %v78_v32, %v77_v31  ;;  %v79_v37 = vld [vmem:[#allocation5 + $0x50] sm:$0xff] }
  0x30   :  { %391 = vmatprep.subr.bf16.mxu0 %v546_v0  ;;  %v80_v38 = vld [vmem:[#allocation5 + $0x58] sm:$0xff]  ;;  %v404_v39 = vpack.c.bf16 %v66_v35, %v65_v34  ;;  %v67_v40 = vld [vmem:[#allocation2 + $0x70] sm:$0xff]  ;;  %v81_v43 = vld [vmem:[#allocation5 + $0x60] sm:$0xff] }
  0x31   :  { %414 = vmatpush3.bf16.msra.mxu1 %v413_v18  ;;  %v68_v41 = vld [vmem:[#allocation2 + $0x78] sm:$0xff]  ;;  %v425_v42 = vpack.c.bf16 %v80_v38, %v79_v37  ;;  %v82_v44 = vld [vmem:[#allocation5 + $0x68] sm:$0xff]  ;;  %v52_v47 = vld [vmem:[%s659_s0] sm:$0xff]  ;;  %s264_s0 = sshll.u32 %s549_s25, 4  ;;  %s265_s0 = int_to_ptr.vmem [resolvable:$true] %s264_s0 }
  0x32   :  { %415 = vmatprep.subr.bf16.mxu1 %v546_v0  ;;  %v407_v45 = vpack.c.bf16 %v68_v41, %v67_v40  ;;  %v428_v46 = vpack.c.bf16 %v82_v44, %v81_v43  ;;  %v83_v48 = vld [vmem:[#allocation5 + $0x70] sm:$0xff]  ;;  %v84_v49 = vld [vmem:[#allocation5 + $0x78] sm:$0xff]  ;;  %v278_v51 = vld [vmem:[%s661_s2] ss:$0 sm:$0xff]  ;;  %s490_s26 = scalar_lea.vmem %s265_s0, 128  ;;  %p495_p3 = scmp.lt.s32.totalorder %s265_s0, %s265_s0 }
  0x33   :  { %393 = vmatpush3.bf16.msra.mxu0 %v392_v14  ;;  %v431_v50 = vpack.c.bf16 %v84_v49, %v83_v48  ;;  %p491_p2 = scmp.ne.s32.totalorder %s265_s0, %s490_s26  ;;  %p496_p4 = scmp.lt.s32.totalorder %s490_s26, %s490_s26 }
  0x34   :  { %394 = vmatprep.subr.bf16.mxu0 %v546_v0 }
  0x35   :  { %417 = vmatpush3.bf16.msra.mxu1 %v416_v24  ;;  %p497_p5 = por %p496_p4, %p495_p3 }
  0x36   :  { %418 = vmatprep.subr.bf16.mxu1 %v546_v0 }
  0x37   :  { %396 = vmatpush3.bf16.msra.mxu0 %v395_v21  ;;  %p498_p6 = pnand %p497_p5, %p491_p2 }
  0x38   :  { %397 = vmatprep.subr.bf16.mxu0 %v546_v0 }
  0x39   :  { %420 = vmatpush3.bf16.msra.mxu1 %v419_v30 }
  0x3a   :  { %421 = vmatprep.subr.bf16.mxu1 %v546_v0 }
  0x3b   :  { %399 = vmatpush3.bf16.msra.mxu0 %v398_v27 }
  0x3c   :  { %400 = vmatprep.subr.bf16.mxu0 %v546_v0 }
  0x3d   :  { %423 = vmatpush3.bf16.msra.mxu1 %v422_v36 }
  0x3e   :  { %424 = vmatprep.subr.bf16.mxu1 %v546_v0 }
  0x3f   :  { %402 = vmatpush3.bf16.msra.mxu0 %v401_v33 }
  0x40   :  { %403 = vmatprep.subr.bf16.mxu0 %v546_v0 }
  0x41   :  { %426 = vmatpush3.bf16.msra.mxu1 %v425_v42 }
  0x42   :  { %427 = vmatprep.subr.bf16.mxu1 %v546_v0 }
  0x43   :  { %405 = vmatpush3.bf16.msra.mxu0 %v404_v39 }
  0x44   :  { %406 = vmatprep.subr.bf16.mxu0 %v546_v0 }
  0x45   :  { %429 = vmatpush3.bf16.msra.mxu1 %v428_v46 }
  0x46   :  { %430 = vmatprep.subr.bf16.mxu1 %v546_v0 }
  0x47   :  { %408 = vmatpush3.bf16.msra.mxu0 %v407_v45 }
  0x49   :  { %432 = vmatpush3.bf16.msra.mxu1 %v431_v50 }
  0x4a   :  { %348 = vmatmul.mubr.f32.vlgmr.msra.gmra.mrb[0].mxu0 %v52_v47 }
 0x11d   :  { %v158_v52 = vpop.f32.mrb[0].mxu0 }
 0x11e   :  { %v159_v53 = vadd.f32 %v278_v51, %v158_v52  ;;  %v349_v54 = vpop.f32.mrb[1].mxu0 }
 0x120   :  { %v162_v55 = vmax.f32 %v159_v53, 0.0 }
 0x122   :  { %163 = vst [vmem:[#allocation8] sm:$0xff] %v162_v55  ;;  %383 = vmatmul.mubr.f32.vlgmr.msra.gmra.mrb[0].mxu1 %v162_v55 }
 0x123   :  { %501 = shalt.err (!%p498_p6)
}
 0x124   :  { %s502_s2 = scalar_lea.hbm %s665_s6, 128 }
 0x125   :  { %p503_p7 = scmp.ne.s32.totalorder %s665_s6, %s502_s2  ;;  %p506_p8 = scmp.lt.u32.totalorder %s502_s2, %s665_s6 }
 0x127   :  { %p508_p9 = pnand %p506_p8, %p503_p7 }
 0x129   :  { %511 = shalt.err (!%p508_p9)
}
 0x12a   :  { %267 = dma.vmem_to_hbm [thread:$0]  %s265_s0, 128, %s665_s6, [#allocation9]   ;;  %v279_v56 = vld [vmem:[%s663_s4] ss:$0 sm:$0xff] }
 0x12b   :  { %s550_s13 = smov [#allocation7]  }
 0x12c   :  { %s254_s14 = sshll.u32 %s550_s13, 4  ;;  %s255_s14 = int_to_ptr.vmem [resolvable:$true] %s254_s14 }
 0x12d   :  { %s512_s15 = scalar_lea.vmem %s255_s14, 128  ;;  %p517_p11 = scmp.lt.s32.totalorder %s255_s14, %s255_s14 }
 0x12e   :  { %p513_p10 = scmp.ne.s32.totalorder %s255_s14, %s512_s15  ;;  %p518_p12 = scmp.lt.s32.totalorder %s512_s15, %s512_s15 }
 0x130   :  { %p519_p13 = por %p518_p12, %p517_p11 }
 0x132   :  { %p520_p0 = pnand %p519_p13, %p513_p10 }
 0x1f5   :  { %v237_v57 = vpop.f32.mrb[0].mxu1 }
 0x1f6   :  { %v238_v58 = vadd.f32 %v279_v56, %v237_v57  ;;  %v384_v59 = vpop.f32.mrb[1].mxu1 }
 0x1f8   :  { %v280_v60 = vmul.f32 -1.442695, %v238_v58 }
 0x1fa   :  { %442 = vpow2.f32 %v280_v60 }
 0x204   :  { %v443_v61 = vpop.eup %442 }
 0x205   :  { %v244_v62 = vadd.f32 1.0, %v443_v61 }
 0x207   :  { %444 = vrcp.f32 %v244_v62 }
 0x211   :  { %v445_v63 = vpop.eup %444 }
 0x212   :  { %247 = vst [vmem:[#allocation7] sm:$0xff] %v445_v63 }
 0x213   :  { %523 = shalt.err (!%p520_p0)
}
 0x214   :  { %s524_s16 = scalar_lea.hbm %s664_s5, 128 }
 0x215   :  { %p525_p1 = scmp.ne.s32.totalorder %s664_s5, %s524_s16  ;;  %p528_p2 = scmp.lt.u32.totalorder %s524_s16, %s664_s5 }
 0x217   :  { %p530_p3 = pnand %p528_p2, %p525_p1 }
 0x219   :  { %533 = shalt.err (!%p530_p3)
}
 0x21a   :  { %257 = dma.vmem_to_hbm [thread:$0]  %s255_s14, 128, %s664_s5, [#allocation4]  }
 0x21b   :  { %538 = dma.done.wait [#allocation4], 128  }
 0x21c   :  { %539 = vsyncadd [#allocation4], 4294967168 }
 0x21d   :  { %540 = dma.done.wait [#allocation9], 128  }
 0x21e   :  { %541 = vsyncadd [#allocation9], 4294967168 }
 0x21f   :  { %274 = vsyncpa [#allocation3], 1 }
 0x220   :  { %275 = vsyncpa [#allocation6], 1 }
 0x221   :  { %276 = vsyncpa [#allocation4], 1 }
 0x222   :  { %277 = vsyncpa [#allocation9], 1 }

</bundles_post_ra>
